<compile_context>
chip_gen: v5e
topology: v5e:2x2
jax: 0.10.0
libtpu: 0.0.40
codegen_flags: <defaults>
</compile_context>

<pallas_src>
import jax
import jax.numpy as jnp
from jax.experimental import pallas as pl
from jax.experimental.pallas import tpu as pltpu


TILE_ROWS = 2048          # (2048, 128) f32 tile = 1 MiB per buffer
LANES = 128
ROW_ALIGN = 8             # sublane alignment: pad flat length to 8 * 128 = 1024

# Below this many elements the pallas_call launch + DMA setup dwarfs the FMAs;
# let XLA fuse the scalar multiply-add instead.
MIN_PALLAS_ELEMS = 8192


def _fma_kernel(w_ref, b_ref, x_ref, o_ref):
    # w_ref / b_ref: (1, 1) f32 scalars in SMEM.
    # x_ref / o_ref: (block_rows, LANES) lane-dense VMEM tiles.
    # Compute in f32 (v5e's VPU has no bf16) and cast back on store.
    w = w_ref[0, 0]
    b = b_ref[0, 0]
    o_ref[...] = (x_ref[...].astype(jnp.float32) * w + b).astype(o_ref.dtype)


def _pallas_fma(x_flat, weight, bias):
    """Elementwise y = x * w + b over a flat vector via a tiled Pallas kernel."""
    n = x_flat.shape[0]

    # Pad only to a sublane-aligned slab (multiple of 8 * 128 elements); the
    # ragged tail of the grid is handled by a cdiv grid + masked last block,
    # so we never materialize a full extra tile of padding.
    align = ROW_ALIGN * LANES
    n_pad = pl.cdiv(n, align) * align
    if n_pad != n:
        x_flat = jnp.pad(x_flat, (0, n_pad - n))

    rows = n_pad // LANES
    block_rows = min(TILE_ROWS, rows)       # rows is always a multiple of 8
    x2d = x_flat.reshape(rows, LANES)       # lane-dense slab: last dim = 128

    w_smem = weight.reshape(1, 1).astype(jnp.float32)
    b_smem = bias.reshape(1, 1).astype(jnp.float32)

    out2d = pl.pallas_call(
        _fma_kernel,
        out_shape=jax.ShapeDtypeStruct((rows, LANES), x2d.dtype),
        grid_spec=pltpu.PrefetchScalarGridSpec(
            num_scalar_prefetch=0,
            grid=(pl.cdiv(rows, block_rows),),
            in_specs=[
                pl.BlockSpec(memory_space=pltpu.SMEM),                 # weight
                pl.BlockSpec(memory_space=pltpu.SMEM),                 # bias
                pl.BlockSpec((block_rows, LANES), lambda i: (i, 0)),   # x tile
            ],
            out_specs=pl.BlockSpec((block_rows, LANES), lambda i: (i, 0)),
        ),
        compiler_params=pltpu.CompilerParams(
            dimension_semantics=("parallel",),  # v7x: 2 TCs split the row tiles
        ),
    )(w_smem, b_smem, x2d)

    y_flat = out2d.reshape(-1)
    if n_pad != n:
        y_flat = y_flat[:n]
    return y_flat


def linear_regression_forward(x, weight, bias, *, force_pallas=False):
    """Equivalent of nn.Linear(1, 1): y = x @ weight.T + bias.

    x: (N, 1) float32 (or bfloat16)
    weight: (1, 1), bias: (1,)
    returns: same shape / dtype family as x.
    """
    orig_shape = x.shape
    if x.dtype not in (jnp.float32, jnp.bfloat16):
        x = x.astype(jnp.float32)

    # in_features == out_features == 1  =>  purely elementwise over all N values.
    x_flat = x.reshape(-1)
    n = x_flat.shape[0]

    if force_pallas or n >= MIN_PALLAS_ELEMS:
        y_flat = _pallas_fma(x_flat, weight, bias)
    else:
        # Tiny-batch fast path: XLA fuses the scalar FMA (no kernel launch).
        w = weight.reshape(()).astype(jnp.float32)
        b = bias.reshape(()).astype(jnp.float32)
        y_flat = (x_flat.astype(jnp.float32) * w + b).astype(x_flat.dtype)

    return y_flat.reshape(orig_shape)


if __name__ == "__main__":
    key = jax.random.PRNGKey(0)
    k_x, k_w, k_b = jax.random.split(key, 3)

    # Deterministic params mirroring nn.Linear(1, 1) default init
    # (uniform(-1/sqrt(fan_in), 1/sqrt(fan_in)) with fan_in = 1).
    weight = jax.random.uniform(k_w, (1, 1), jnp.float32, minval=-1.0, maxval=1.0)
    bias = jax.random.uniform(k_b, (1,), jnp.float32, minval=-1.0, maxval=1.0)

    # Small batch of scalar features, consistent with Linear(1, 1).
    x = jax.random.normal(k_x, (8, 1), jnp.float32)
    y_ref = x @ weight.T + bias

    # Exercise the Pallas kernel path (force it even though N is tiny).
    y_pallas = linear_regression_forward(x, weight, bias, force_pallas=True)
    jax.block_until_ready(y_pallas)
    assert y_pallas.shape == (8, 1)
    assert jnp.allclose(y_pallas, y_ref, atol=1e-6), (y_pallas, y_ref)

    # Also check the small-batch dispatch path (XLA-fused FMA, no kernel launch).
    y_small = linear_regression_forward(x, weight, bias)
    jax.block_until_ready(y_small)
    assert jnp.allclose(y_small, y_ref, atol=1e-6), (y_small, y_ref)

    print("KERNEL_OK")
</pallas_src>

<mosaic_0001>
module attributes {stable_mosaic.version = 11 : i64} {
  func.func @_fma_kernel(%arg0: i32, %arg1: memref<1x1xf32, #tpu.memory_space<smem>>, %arg2: memref<1x1xf32, #tpu.memory_space<smem>>, %arg3: memref<8x128xf32, #tpu.memory_space<vmem>>, %arg4: memref<8x128xf32, #tpu.memory_space<vmem>>) attributes {dimension_semantics = [#tpu.dimension_semantics<parallel>], iteration_bounds = array<i64: 1>, scalar_prefetch = 0 : i64, scratch_operands = 0 : i64, tpu.core_type = #tpu.core_type<tc>, window_params = [{transform_indices = @transform_0, window_bounds = array<i64: 1, 1>}, {transform_indices = @transform_1, window_bounds = array<i64: 1, 1>}, {transform_indices = @transform_2, window_bounds = array<i64: 8, 128>}, {transform_indices = @transform_3, window_bounds = array<i64: 8, 128>}]} {
    %c0 = arith.constant 0 : index
    %c0_0 = arith.constant 0 : index
    %0 = memref.load %arg1[%c0, %c0_0] : memref<1x1xf32, #tpu.memory_space<smem>>
    %c0_1 = arith.constant 0 : index
    %c0_2 = arith.constant 0 : index
    %1 = memref.load %arg2[%c0_1, %c0_2] : memref<1x1xf32, #tpu.memory_space<smem>>
    %c0_3 = arith.constant 0 : index
    %c0_4 = arith.constant 0 : index
    %2 = vector.load %arg3[%c0_3, %c0_4] : memref<8x128xf32, #tpu.memory_space<vmem>>, vector<8x128xf32>
    %3 = vector.broadcast %0 : f32 to vector<8x128xf32>
    %4 = arith.mulf %2, %3 : vector<8x128xf32>
    %5 = vector.broadcast %1 : f32 to vector<8x128xf32>
    %6 = arith.addf %4, %5 : vector<8x128xf32>
    %c0_5 = arith.constant 0 : index
    %c0_6 = arith.constant 0 : index
    %7 = vector.load %arg4[%c0_5, %c0_6] : memref<8x128xf32, #tpu.memory_space<vmem>>, vector<8x128xf32>
    tpu.vector_store %arg4[%c0_5, %c0_6], %6 {strides = array<i32>} : memref<8x128xf32, #tpu.memory_space<vmem>>, vector<8x128xf32>,
    return
  }
  func.func @transform_0(%arg0: i32) -> (i32, i32) {
    %c0_i32 = arith.constant 0 : i32
    %c0_i32_0 = arith.constant 0 : i32
    %c0_i32_1 = arith.constant 0 : i32
    return %c0_i32, %c0_i32_0 : i32, i32
  }
  func.func @transform_1(%arg0: i32) -> (i32, i32) {
    %c0_i32 = arith.constant 0 : i32
    %c0_i32_0 = arith.constant 0 : i32
    %c0_i32_1 = arith.constant 0 : i32
    return %c0_i32, %c0_i32_0 : i32, i32
  }
  func.func @transform_2(%arg0: i32) -> (i32, i32) {
    %c0_i32 = arith.constant 0 : i32
    %c0_i32_0 = arith.constant 0 : i32
    return %arg0, %c0_i32 : i32, i32
  }
  func.func @transform_3(%arg0: i32) -> (i32, i32) {
    %c0_i32 = arith.constant 0 : i32
    %c0_i32_0 = arith.constant 0 : i32
    return %arg0, %c0_i32 : i32, i32
  }
}

</mosaic_0001>

<bundles_post_ra>
// kernel: tpu_custom_call.1
= control target key start
LH: loop header
LB: loop body
LE: loop exit
PB: predicated region body
PF: predicated region fallthrough
CT: control target
= control target key end

     0   :  { %10 = vsyncpa [#allocation5], 0  ;;  %s144_s0 = inlined_call_operand.<no memory space> [shape: f32[1,1], index: 0, kind: input, shape index: {}]   ;;  %s145_s1 = inlined_call_operand.<no memory space> [shape: f32[1,1], index: 1, kind: input, shape index: {}]   ;;  %s146_s2 = inlined_call_operand.hbm [shape: f32[8,128], index: 2, kind: input, shape index: {}]   ;;  %s147_s3 = inlined_call_operand.hbm [shape: f32[8,128], index: 3, kind: output, shape index: {}]  }
   0x1   :  { %11 = vsyncpa [#allocation6], 0  ;;  %s21_s14 = sshll.u32 %s146_s2, 4  ;;  %s110_s15 = smov [#allocation4]   ;;  %s22_s14 = int_to_ptr.hbm [resolvable:$true] %s21_s14 }
   0x2   :  { %s23_s16 = sshll.u32 %s110_s15, 4  ;;  %s24_s16 = int_to_ptr.vmem [resolvable:$true] %s23_s16 }
   0x3   :  { %26 = dma.hbm_to_vmem [thread:$0]  %s22_s14, 128, %s24_s16, [#allocation5]  }
   0x4   :  { %106 = dma.done.wait [#allocation5], 128  }
   0x5   :  { %107 = vsyncadd [#allocation5], 4294967168  ;;  %v34_v0 = vstv %s144_s0  ;;  %v33_v1 = vld [vmem:[#allocation4] sm:$0xff]  ;;  %v36_v2 = vstv %s145_s1  ;;  %s111_s21 = smov [#allocation7]   ;;  %s46_s24 = sshll.u32 %s147_s3, 4  ;;  %s47_s24 = int_to_ptr.hbm [resolvable:$true] %s46_s24 }
   0x6   :  { %s44_s22 = sshll.u32 %s111_s21, 4  ;;  %v35_v3 = vmul.f32 %v34_v0, %v33_v1  ;;  %s45_s22 = int_to_ptr.vmem [resolvable:$true] %s44_s22 }
   0x8   :  { %v37_v4 = vadd.f32 %v36_v2, %v35_v3 }
   0xa   :  { %38 = vst [vmem:[#allocation7] sm:$0xff] %v37_v4 }
   0xb   :  { %49 = dma.vmem_to_hbm [thread:$0]  %s45_s22, 128, %s47_s24, [#allocation6]  }
   0xc   :  { %108 = dma.done.wait [#allocation6], 128  }
   0xd   :  { %109 = vsyncadd [#allocation6], 4294967168 }
   0xe   :  { %54 = vsyncpa [#allocation5], 1 }
   0xf   :  { %55 = vsyncpa [#allocation6], 1 }

</bundles_post_ra>
